<compile_context>
chip_gen: v5e
topology: v5e:2x2
jax: 0.10.0
libtpu: 0.0.40
codegen_flags: <defaults>
</compile_context>

<pallas_src>
import functools

import jax
import jax.numpy as jnp
from jax.experimental import pallas as pl
from jax.experimental.pallas import tpu as pltpu

SCALING = 0.01


def _round_up(v, m):
    return ((v + m - 1) // m) * m


def _sublane_min(dtype):
    # min second-minor tile per dtype width: f32 -> 8, bf16 -> 16, int8/fp8 -> 32
    return {4: 8, 2: 16, 1: 32}.get(jnp.dtype(dtype).itemsize, 8)


def _largest_dividing_tile(total, unit, cap):
    """Largest multiple of `unit` that divides `total` and is <= cap."""
    best = unit
    cap = max(unit, min(cap, total))
    d = unit
    while d <= cap:
        if total % d == 0:
            best = d
        d += unit
    return best


def _vmem_capacity_bytes():
    try:
        return int(pltpu.get_tpu_info().vmem_capacity_bytes)
    except Exception:
        return 64 << 20  # conservative default (v7x per-TensorCore VMEM)


def lora_kernel(x_ref, a_ref, b_ref, o_ref, xa_ref, *, scaling):
    # Compute (and cache) xa = scaling * (x @ lora_A) once per batch tile.
    # The x tile and this scratch stay resident across the inner out-feature
    # axis, so the heavy K = in_features matmul runs once per batch tile.
    @pl.when(pl.program_id(1) == 0)
    def _():
        xa = jnp.dot(x_ref[...], a_ref[...], preferred_element_type=jnp.float32)
        xa_ref[...] = xa * jnp.float32(scaling)

    # Tiny-K second matmul against the current out-feature tile of lora_B.
    y = jnp.dot(xa_ref[...].astype(b_ref.dtype), b_ref[...],
                preferred_element_type=jnp.float32)
    o_ref[...] = y.astype(o_ref.dtype)


def lora_forward(x, lora_A, lora_B, *, scaling=SCALING, tb=None, tn=None):
    batch, in_features = x.shape
    in_f2, rank = lora_A.shape
    rank2, out_features = lora_B.shape
    assert in_features == in_f2 and rank == rank2

    sub = _sublane_min(x.dtype)

    # ---- rank: pad only to the sublane minimum (zero pad is exact) ----------
    r_sub = max(_sublane_min(lora_A.dtype), _sublane_min(lora_B.dtype))
    r_p = _round_up(rank, r_sub)
    if r_p != rank:
        lora_A = jnp.zeros((in_features, r_p), lora_A.dtype).at[:, :rank].set(lora_A)
        lora_B = jnp.zeros((r_p, out_features), lora_B.dtype).at[:rank, :].set(lora_B)

    # ---- batch: pad rows only when not a sublane multiple -------------------
    b_p = batch if batch % sub == 0 else _round_up(batch, sub)
    if b_p != batch:
        x = jnp.zeros((b_p, in_features), x.dtype).at[:batch, :].set(x)

    # ---- VMEM budget (generation-aware) --------------------------------------
    phys = _vmem_capacity_bytes()
    usable = max(16 << 20, (phys * 3) // 4)        # ~48 MiB on v7x, ~96 MiB on v5e/v6e
    margin = 4 << 20

    elt_x = jnp.dtype(x.dtype).itemsize
    elt_a = jnp.dtype(lora_A.dtype).itemsize
    elt_b = jnp.dtype(lora_B.dtype).itemsize
    elt_o = elt_x

    # ---- out_features tiling --------------------------------------------------
    tn_cap_default = 1024 if usable > (48 << 20) else 512
    tn_cap = tn if tn is not None else tn_cap_default
    if out_features % 128 == 0:
        TN = _largest_dividing_tile(out_features, 128, tn_cap)
        out_p = out_features
    elif out_features <= tn_cap_default:
        TN = out_features                      # single full-dim block (legal; small)
        out_p = out_features
    else:
        out_p = _round_up(out_features, 128)   # rare: large & misaligned -> pad
        TN = _largest_dividing_tile(out_p, 128, tn_cap)
        lora_B = jnp.zeros((r_p, out_p), lora_B.dtype).at[:, :out_features].set(lora_B)

    # ---- batch tiling: largest divisor of b_p that fits the VMEM budget ------
    fixed = 2 * in_features * r_p * elt_a + 2 * r_p * TN * elt_b + margin
    per_row = 2 * in_features * elt_x + 2 * TN * elt_o + r_p * 4
    tb_budget = max(sub, ((usable - fixed) // per_row) // sub * sub)
    tb_cap = min(tb_budget, 2048)
    if tb is not None:
        tb_cap = min(tb_cap, max(sub, _round_up(tb, sub)))

    if b_p <= tb_cap:
        # Fits in one tile; still split in two when tiles stay large so v7x's
        # second TensorCore gets work on the "parallel" batch axis.
        if b_p % 2 == 0 and b_p // 2 >= 256:
            TB = _largest_dividing_tile(b_p, sub, b_p // 2)
        else:
            TB = b_p
    else:
        TB = _largest_dividing_tile(b_p, sub, tb_cap)

    n_btiles = b_p // TB
    grid = (n_btiles, out_p // TN)

    # ---- consistent VMEM accounting for the compiler limit -------------------
    total_vmem = (2 * TB * in_features * elt_x       # x (double-buffered)
                  + 2 * in_features * r_p * elt_a    # lora_A
                  + 2 * r_p * TN * elt_b             # lora_B tile
                  + 2 * TB * TN * elt_o              # output tile
                  + TB * r_p * 4)                    # xa scratch
    vmem_limit = int(min(max(total_vmem + margin, 16 << 20), phys - (8 << 20)))

    cost = pl.CostEstimate(
        flops=2 * b_p * in_features * r_p + 2 * b_p * r_p * out_p,
        bytes_accessed=(b_p * in_features * elt_x
                        + in_features * r_p * elt_a
                        + n_btiles * r_p * out_p * elt_b
                        + b_p * out_p * elt_o),
        transcendentals=0,
    )

    out_arr = pl.pallas_call(
        functools.partial(lora_kernel, scaling=scaling),
        out_shape=jax.ShapeDtypeStruct((b_p, out_p), x.dtype),
        grid=grid,
        in_specs=[
            # x tile: constant across the inner out-feature axis -> resident.
            pl.BlockSpec((TB, in_features), lambda i, j: (i, 0)),
            # lora_A: small, resident for the whole kernel.
            pl.BlockSpec((in_features, r_p), lambda i, j: (0, 0)),
            # lora_B: tiled along out_features only.
            pl.BlockSpec((r_p, TN), lambda i, j: (0, j)),
        ],
        out_specs=pl.BlockSpec((TB, TN), lambda i, j: (i, j)),
        scratch_shapes=[pltpu.VMEM((TB, r_p), jnp.float32)],   # cached xa
        compiler_params=pltpu.CompilerParams(
            dimension_semantics=("parallel", "arbitrary"),
            vmem_limit_bytes=vmem_limit,
        ),
        cost_estimate=cost,
    )(x, lora_A, lora_B)

    if b_p != batch or out_p != out_features:
        out_arr = out_arr[:batch, :out_features]
    return out_arr


if __name__ == "__main__":
    key = jax.random.PRNGKey(0)
    k1, k2, k3, k4, k5, k6, k7, k8, k9 = jax.random.split(key, 9)

    # --- Test 1: module-implied small shapes (batch=8, in=32, out=32, rank=4)
    batch, in_f, out_f, rank = 8, 32, 32, 4
    x = jax.random.normal(k1, (batch, in_f), dtype=jnp.float32)
    A = jax.random.normal(k2, (in_f, rank), dtype=jnp.float32)
    B = jax.random.normal(k3, (rank, out_f), dtype=jnp.float32)  # non-zero: exercises dot #2
    out = jax.block_until_ready(lora_forward(x, A, B))
    ref = SCALING * (x @ A @ B)
    assert out.shape == (batch, out_f)
    assert jnp.allclose(out, ref, atol=1e-4, rtol=1e-4)

    # Module-default init (lora_B = zeros) must give exactly zero output.
    B0 = jnp.zeros((rank, out_f), dtype=jnp.float32)
    out0 = jax.block_until_ready(lora_forward(x, A, B0))
    assert jnp.allclose(out0, jnp.zeros_like(out0), atol=1e-6)

    # --- Test 2: multi-tile path (batch tiles + out-feature tiles, xa cached
    # across the inner axis, in_features not a multiple of 128).
    batch, in_f, out_f, rank = 32, 64, 256, 4
    x = jax.random.normal(k4, (batch, in_f), dtype=jnp.float32)
    A = jax.random.normal(k5, (in_f, rank), dtype=jnp.float32)
    B = jax.random.normal(k6, (rank, out_f), dtype=jnp.float32)
    out = jax.block_until_ready(lora_forward(x, A, B, tb=16, tn=128))  # grid (2, 2)
    ref = SCALING * (x @ A @ B)
    assert out.shape == (batch, out_f)
    assert jnp.allclose(out, ref, atol=1e-4, rtol=1e-4)

    # --- Test 3: misaligned batch / rank / out_features (padding + final slice).
    batch, in_f, out_f, rank = 10, 48, 40, 3
    x = jax.random.normal(k7, (batch, in_f), dtype=jnp.float32)
    A = jax.random.normal(k8, (in_f, rank), dtype=jnp.float32)
    B = jax.random.normal(k9, (rank, out_f), dtype=jnp.float32)
    out = jax.block_until_ready(lora_forward(x, A, B))
    ref = SCALING * (x @ A @ B)
    assert out.shape == (batch, out_f)
    assert jnp.allclose(out, ref, atol=1e-4, rtol=1e-4)

    print("KERNEL_OK")
</pallas_src>

<mosaic_0001>
module attributes {stable_mosaic.version = 11 : i64} {
  func.func @lora_kernel(%arg0: i32, %arg1: i32, %arg2: memref<8x32xf32, #tpu.memory_space<vmem>>, %arg3: memref<32x8xf32, #tpu.memory_space<vmem>>, %arg4: memref<8x32xf32, #tpu.memory_space<vmem>>, %arg5: memref<8x32xf32, #tpu.memory_space<vmem>>, %arg6: memref<8x8xf32, #tpu.memory_space<vmem>>) attributes {dimension_semantics = [#tpu.dimension_semantics<parallel>, #tpu.dimension_semantics<arbitrary>], iteration_bounds = array<i64: 1, 1>, scalar_prefetch = 0 : i64, scratch_operands = 1 : i64, tpu.core_type = #tpu.core_type<tc>, window_params = [{transform_indices = @transform_0, window_bounds = array<i64: 8, 32>}, {pipeline_mode = #tpu.pipeline_mode<synchronous>, transform_indices = @transform_1, window_bounds = array<i64: 32, 8>}, {transform_indices = @transform_2, window_bounds = array<i64: 8, 32>}, {transform_indices = @transform_3, window_bounds = array<i64: 8, 32>}]} {
    %c0_i32 = arith.constant 0 : i32
    %0 = arith.cmpi eq, %arg1, %c0_i32 : i32
    %1 = arith.extui %0 : i1 to i32
    %c0_i32_0 = arith.constant 0 : i32
    %2 = arith.cmpi ne, %1, %c0_i32_0 : i32
    scf.if %2 {
      %c0_6 = arith.constant 0 : index
      %c0_7 = arith.constant 0 : index
      %7 = vector.load %arg2[%c0_6, %c0_7] : memref<8x32xf32, #tpu.memory_space<vmem>>, vector<8x32xf32>
      %c0_8 = arith.constant 0 : index
      %c0_9 = arith.constant 0 : index
      %8 = vector.load %arg3[%c0_8, %c0_9] : memref<32x8xf32, #tpu.memory_space<vmem>>, vector<32x8xf32>
      %cst_10 = arith.constant dense<0.000000e+00> : vector<8x8xf32>
      %9 = tpu.matmul %7, %8, %cst_10 {dimension_numbers = #tpu.dot_dimension_numbers<[1], [0], [0], [1], [0, 0, 1, 1], [], []>} : vector<8x32xf32>, vector<32x8xf32>, vector<8x8xf32> -> vector<8x8xf32>
      %cst_11 = arith.constant 0.00999999977 : f32
      %10 = vector.broadcast %cst_11 : f32 to vector<8x8xf32>
      %11 = arith.mulf %9, %10 : vector<8x8xf32>
      %c0_12 = arith.constant 0 : index
      %c0_13 = arith.constant 0 : index
      %12 = vector.load %arg6[%c0_12, %c0_13] : memref<8x8xf32, #tpu.memory_space<vmem>>, vector<8x8xf32>
      tpu.vector_store %arg6[%c0_12, %c0_13], %11 {strides = array<i32>} : memref<8x8xf32, #tpu.memory_space<vmem>>, vector<8x8xf32>,
    } else {
    }
    %c0 = arith.constant 0 : index
    %c0_1 = arith.constant 0 : index
    %3 = vector.load %arg6[%c0, %c0_1] : memref<8x8xf32, #tpu.memory_space<vmem>>, vector<8x8xf32>
    %c0_2 = arith.constant 0 : index
    %c0_3 = arith.constant 0 : index
    %4 = vector.load %arg4[%c0_2, %c0_3] : memref<8x32xf32, #tpu.memory_space<vmem>>, vector<8x32xf32>
    %cst = arith.constant dense<0.000000e+00> : vector<8x32xf32>
    %5 = tpu.matmul %3, %4, %cst {dimension_numbers = #tpu.dot_dimension_numbers<[1], [0], [0], [1], [0, 0, 1, 1], [], []>} : vector<8x8xf32>, vector<8x32xf32>, vector<8x32xf32> -> vector<8x32xf32>
    %c0_4 = arith.constant 0 : index
    %c0_5 = arith.constant 0 : index
    %6 = vector.load %arg5[%c0_4, %c0_5] : memref<8x32xf32, #tpu.memory_space<vmem>>, vector<8x32xf32>
    tpu.vector_store %arg5[%c0_4, %c0_5], %5 {strides = array<i32>} : memref<8x32xf32, #tpu.memory_space<vmem>>, vector<8x32xf32>,
    return
  }
  func.func @transform_0(%arg0: i32, %arg1: i32) -> (i32, i32) {
    %c0_i32 = arith.constant 0 : i32
    %c0_i32_0 = arith.constant 0 : i32
    return %arg0, %c0_i32 : i32, i32
  }
  func.func @transform_1(%arg0: i32, %arg1: i32) -> (i32, i32) {
    %c0_i32 = arith.constant 0 : i32
    %c0_i32_0 = arith.constant 0 : i32
    %c0_i32_1 = arith.constant 0 : i32
    return %c0_i32, %c0_i32_0 : i32, i32
  }
  func.func @transform_2(%arg0: i32, %arg1: i32) -> (i32, i32) {
    %c0_i32 = arith.constant 0 : i32
    %c0_i32_0 = arith.constant 0 : i32
    return %c0_i32, %arg1 : i32, i32
  }
  func.func @transform_3(%arg0: i32, %arg1: i32) -> (i32, i32) {
    %c0_i32 = arith.constant 0 : i32
    return %arg0, %arg1 : i32, i32
  }
}

</mosaic_0001>

<bundles_post_ra>
// kernel: tpu_custom_call.1
= control target key start
LH: loop header
LB: loop body
LE: loop exit
PB: predicated region body
PF: predicated region fallthrough
CT: control target
= control target key end

     0   :  { %s168_s0 = inlined_call_operand.vmem [shape: f32[8,32], index: 0, kind: input, shape index: {}]   ;;  %s169_s1 = inlined_call_operand.vmem [shape: f32[32,8], index: 1, kind: input, shape index: {}]   ;;  %s170_s2 = inlined_call_operand.vmem [shape: f32[8,32], index: 2, kind: input, shape index: {}]   ;;  %s171_s3 = inlined_call_operand.hbm [shape: f32[8,32], index: 3, kind: output, shape index: {}]  }
   0x1   :  { %v23_v0 = vld [vmem:[%s169_s1 + $0x18] sm:$0xff]  ;;  %v22_v1 = vld [vmem:[%s169_s1 + $0x10] sm:$0xff] }
   0x2   :  { %40 = vmatpush.msra.mxu0 %v23_v0 }
   0x3   :  { %8 = vsyncpa [#allocation4], 0  ;;  %v21_v2 = vld [vmem:[%s169_s1 + $0x8] sm:$0xff]  ;;  %v20_v3 = vld [vmem:[%s169_s1] sm:$0xff]  ;;  %vm24_vm0 = vcmask 261120   ;;  %vm49_vm1 = vcmask 64512  }
   0x4   :  { %41 = vmatpush.msra.mxu0 %v22_v1  ;;  %v19_v4 = vld [vmem:[%s168_s0] sm:$0xff]  ;;  %s124_s1 = smov [#allocation3]   ;;  %s86_s0 = sshll.u32 %s171_s3, 4  ;;  %s87_s0 = int_to_ptr.hbm [resolvable:$true] %s86_s0 }
   0x5   :  { %v52_v5 = vld [vmem:[%s170_s2] sm:$0xff]  ;;  %s84_s24 = sshll.u32 %s124_s1, 4  ;;  %s85_s24 = int_to_ptr.vmem [resolvable:$true] %s84_s24 }
   0x6   :  { %42 = vmatpush.msra.mxu0 %v21_v2  ;;  %72 = vmatpush.msra.mxu1 %v52_v5 }
   0x8   :  { %43 = vmatpush.msra.mxu0 %v20_v3 }
   0x9   :  { %95 = vmatmul.msk.f32.vlgmr.msra.gmra.mxu0 %vm24_vm0, %v19_v4 }
  0x86   :  { %v45_v6 = vpop.f32.mrf.mxu0 }
  0x87   :  { %v48_v7 = vmul.f32 0.01, %v45_v6 }
  0x89   :  { %50 = vst.msk [vmem:[#allocation2] sm:$0xff] %vm49_vm1, %v48_v7 }
  0x90   :  { %v51_v8 = vld [vmem:[#allocation2] sm:$0xff] }
  0x91   :  { %96 = vmatmul.msk.f32.vlgmr.msra.gmra.mxu1 %vm49_vm1, %v51_v8 }
 0x10e   :  { %v74_v9 = vpop.f32.mrf.mxu1 }
 0x10f   :  { %78 = vst.msk [vmem:[#allocation3] sm:$0xff] %vm24_vm0, %v74_v9 }
 0x110   :  { %89 = dma.vmem_to_hbm [thread:$0]  %s85_s24, 128, %s87_s0, [#allocation4]  }
 0x111   :  { %122 = dma.done.wait [#allocation4], 128  }
 0x112   :  { %123 = vsyncadd [#allocation4], 4294967168 }
 0x113   :  { %94 = vsyncpa [#allocation4], 1 }

</bundles_post_ra>
